<compile_context>
chip_gen: v7x
topology: tpu7x:2x2x1
jax: 0.10.0
libtpu: 0.0.40
codegen_flags: <defaults>
</compile_context>

<pallas_src>
import jax
import jax.numpy as jnp
from jax.experimental import pallas as pl
from jax.experimental.pallas import tpu as pltpu


def _round_up(x, m):
    return ((x + m - 1) // m) * m


def _mlp_kernel(x_ref,
                w1_ref, b1_ref,
                w2_ref, b2_ref,
                w3_ref, b3_ref,
                w4_ref, b4_ref,
                o_ref):
    # MXU operand dtype is whatever the weights were passed as (f32 or bf16).
    mxu_dtype = w1_ref.dtype

    x = x_ref[...]
    if x.dtype != mxu_dtype:          # trace-time conditional, in-register cast
        x = x.astype(mxu_dtype)

    # All matmuls accumulate in f32 on the MXU; bias-add / ReLU stay f32 on
    # the VPU (v5e has no bf16 VALU).
    h = jnp.dot(x, w1_ref[...], preferred_element_type=jnp.float32) + b1_ref[...]
    h = jnp.maximum(h, 0.0)

    h = jnp.dot(h.astype(mxu_dtype), w2_ref[...],
                preferred_element_type=jnp.float32) + b2_ref[...]
    h = jnp.maximum(h, 0.0)

    h = jnp.dot(h.astype(mxu_dtype), w3_ref[...],
                preferred_element_type=jnp.float32) + b3_ref[...]
    h = jnp.maximum(h, 0.0)

    h = jnp.dot(h.astype(mxu_dtype), w4_ref[...],
                preferred_element_type=jnp.float32) + b4_ref[...]

    o_ref[...] = h.astype(o_ref.dtype)   # narrow (tb, out_size) store


def mlp_forward(x, params, *, block_rows=2048, min_grid_steps=4,
                mxu_dtype=jnp.bfloat16, out_dtype=jnp.float32):
    """Run the 4-layer MLP in one batch-tiled Pallas call.

    x:              (B, input_size) float32
    params:         dict with w1..w4 as (in, out) and b1..b4 as (1, out), f32
    block_rows:     max batch-tile rows (VMEM-budgeted for v7x's 32 MiB scoped
                    default; v5e/v6e could go larger but gain little)
    min_grid_steps: cap the tile so the grid has at least this many steps
                    (so the parallel batch axis spans both v7x TensorCores)
    mxu_dtype:      None -> f32 MXU operands (exact); jnp.bfloat16 -> bf16
                    operands with f32 accumulation (recommended on v6e/v7x)
    out_dtype:      dtype of the returned array (bf16 halves writeback if the
                    consumer allows it)
    """
    B, in_features = x.shape
    out_size = params["w4"].shape[1]

    weights = [params["w1"], params["w2"], params["w3"], params["w4"]]
    biases = [params["b1"], params["b2"], params["b3"], params["b4"]]  # stay f32
    if mxu_dtype is not None:
        # One-time tiny cast of the weights; x is cast in-register inside the
        # kernel so no extra XLA pass over the batch-scaled input is emitted.
        weights = [w.astype(mxu_dtype) for w in weights]

    # ---- batch tile: multiple of 8, <= block_rows, >= min_grid_steps steps ----
    tb = min(block_rows, _round_up(B, 8))
    if min_grid_steps > 1:
        tb = min(tb, max(8, _round_up(pl.cdiv(B, min_grid_steps), 8)))
    grid = (pl.cdiv(B, tb),)   # ragged last block handled (masked) by Pallas

    # x / out move per grid step (double-buffered); weights & biases have a
    # grid-invariant index_map -> VMEM-resident for the whole grid.
    in_specs = [pl.BlockSpec((tb, in_features), lambda i: (i, 0))]
    for w, b in zip(weights, biases):
        in_specs.append(pl.BlockSpec(w.shape, lambda i: (0, 0)))
        in_specs.append(pl.BlockSpec(b.shape, lambda i: (0, 0)))
    out_spec = pl.BlockSpec((tb, out_size), lambda i: (i, 0))

    # Advisory cost hint so XLA schedules this short, BW-bound call sensibly.
    flops = 2 * B * sum(int(w.shape[0]) * int(w.shape[1]) for w in weights)
    param_bytes = sum(int(a.size) * a.dtype.itemsize for a in weights + biases)
    bytes_accessed = (int(x.size) * x.dtype.itemsize
                      + B * out_size * jnp.dtype(out_dtype).itemsize
                      + param_bytes)
    cost = pl.CostEstimate(flops=flops, transcendentals=0,
                           bytes_accessed=bytes_accessed)

    out = pl.pallas_call(
        _mlp_kernel,
        out_shape=jax.ShapeDtypeStruct((B, out_size), out_dtype),
        grid=grid,
        in_specs=in_specs,
        out_specs=out_spec,
        compiler_params=pltpu.CompilerParams(
            dimension_semantics=("parallel",)),  # batch tiles shard across TCs
        cost_estimate=cost,
    )(x,
      weights[0], biases[0],
      weights[1], biases[1],
      weights[2], biases[2],
      weights[3], biases[3])

    return out


def init_params(key, input_size, output_size):
    """Deterministic parameter init (PyTorch Linear-style bounds, weights
    stored transposed as (in, out))."""
    sizes = [(input_size, 64), (64, 32), (32, 16), (16, output_size)]
    params = {}
    for i, (fan_in, fan_out) in enumerate(sizes, start=1):
        key, kw, kb = jax.random.split(key, 3)
        bound = 1.0 / jnp.sqrt(fan_in)
        params[f"w{i}"] = jax.random.uniform(
            kw, (fan_in, fan_out), jnp.float32, -bound, bound)
        params[f"b{i}"] = jax.random.uniform(
            kb, (1, fan_out), jnp.float32, -bound, bound)
    return params


def mlp_reference(x, params):
    """Pure-JAX reference for correctness checking."""
    h = jnp.maximum(x @ params["w1"] + params["b1"], 0.0)
    h = jnp.maximum(h @ params["w2"] + params["b2"], 0.0)
    h = jnp.maximum(h @ params["w3"] + params["b3"], 0.0)
    return h @ params["w4"] + params["b4"]


if __name__ == "__main__":
    input_size = 8
    output_size = 4
    batch = 8

    key = jax.random.PRNGKey(0)
    key, kx = jax.random.split(key)
    x = jax.random.normal(kx, (batch, input_size), jnp.float32)
    params = init_params(key, input_size, output_size)

    ref = mlp_reference(x, params)

    # Exact f32 MXU-operand path.
    out_f32 = jax.block_until_ready(mlp_forward(x, params, mxu_dtype=None))
    assert out_f32.shape == (batch, output_size)
    assert jnp.allclose(out_f32, ref, atol=1e-5, rtol=1e-5), "f32 mismatch vs reference"

    # Default bf16 MXU-operand path (f32 accumulation/activations).
    out_bf16 = jax.block_until_ready(mlp_forward(x, params))
    assert out_bf16.shape == (batch, output_size)
    assert jnp.allclose(out_bf16, ref, atol=5e-2, rtol=5e-2), "bf16 mismatch vs reference"

    # Ragged batch (B not a multiple of the tile): exercises the no-pad,
    # grid=cdiv masked-last-block path.
    key, kr = jax.random.split(key)
    xr = jax.random.normal(kr, (batch + 2, input_size), jnp.float32)
    out_r = jax.block_until_ready(mlp_forward(xr, params, mxu_dtype=None))
    assert out_r.shape == (batch + 2, output_size)
    assert jnp.allclose(out_r, mlp_reference(xr, params), atol=1e-5, rtol=1e-5), \
        "ragged-batch mismatch vs reference"

    print("KERNEL_OK")
</pallas_src>

<mosaic_0001>
module attributes {stable_mosaic.version = 11 : i64} {
  func.func @_mlp_kernel(%arg0: i32, %arg1: memref<8x8xf32, #tpu.memory_space<vmem>>, %arg2: memref<8x64xf32, #tpu.memory_space<vmem>>, %arg3: memref<1x64xf32, #tpu.memory_space<vmem>>, %arg4: memref<64x32xf32, #tpu.memory_space<vmem>>, %arg5: memref<1x32xf32, #tpu.memory_space<vmem>>, %arg6: memref<32x16xf32, #tpu.memory_space<vmem>>, %arg7: memref<1x16xf32, #tpu.memory_space<vmem>>, %arg8: memref<16x4xf32, #tpu.memory_space<vmem>>, %arg9: memref<1x4xf32, #tpu.memory_space<vmem>>, %arg10: memref<8x4xf32, #tpu.memory_space<vmem>>) attributes {dimension_semantics = [#tpu.dimension_semantics<parallel>], iteration_bounds = array<i64: 1>, scalar_prefetch = 0 : i64, scratch_operands = 0 : i64, tpu.core_type = #tpu.core_type<tc>, window_params = [{transform_indices = @transform_0, window_bounds = array<i64: 8, 8>}, {pipeline_mode = #tpu.pipeline_mode<synchronous>, transform_indices = @transform_1, window_bounds = array<i64: 8, 64>}, {pipeline_mode = #tpu.pipeline_mode<synchronous>, transform_indices = @transform_2, window_bounds = array<i64: 1, 64>}, {pipeline_mode = #tpu.pipeline_mode<synchronous>, transform_indices = @transform_3, window_bounds = array<i64: 64, 32>}, {pipeline_mode = #tpu.pipeline_mode<synchronous>, transform_indices = @transform_4, window_bounds = array<i64: 1, 32>}, {pipeline_mode = #tpu.pipeline_mode<synchronous>, transform_indices = @transform_5, window_bounds = array<i64: 32, 16>}, {pipeline_mode = #tpu.pipeline_mode<synchronous>, transform_indices = @transform_6, window_bounds = array<i64: 1, 16>}, {pipeline_mode = #tpu.pipeline_mode<synchronous>, transform_indices = @transform_7, window_bounds = array<i64: 16, 4>}, {pipeline_mode = #tpu.pipeline_mode<synchronous>, transform_indices = @transform_8, window_bounds = array<i64: 1, 4>}, {transform_indices = @transform_9, window_bounds = array<i64: 8, 4>}]} {
    %c0 = arith.constant 0 : index
    %c0_0 = arith.constant 0 : index
    %0 = vector.load %arg1[%c0, %c0_0] : memref<8x8xf32, #tpu.memory_space<vmem>>, vector<8x8xf32>
    %c0_1 = arith.constant 0 : index
    %c0_2 = arith.constant 0 : index
    %1 = vector.load %arg2[%c0_1, %c0_2] : memref<8x64xf32, #tpu.memory_space<vmem>>, vector<8x64xf32>
    %cst = arith.constant dense<0.000000e+00> : vector<8x64xf32>
    %2 = tpu.matmul %0, %1, %cst {dimension_numbers = #tpu.dot_dimension_numbers<[1], [0], [0], [1], [0, 0, 1, 1], [], []>} : vector<8x8xf32>, vector<8x64xf32>, vector<8x64xf32> -> vector<8x64xf32>
    %c0_3 = arith.constant 0 : index
    %c0_4 = arith.constant 0 : index
    %3 = vector.load %arg3[%c0_3, %c0_4] : memref<1x64xf32, #tpu.memory_space<vmem>>, vector<1x64xf32>
    %4 = vector.broadcast %3 : vector<1x64xf32> to vector<8x64xf32>
    %5 = arith.addf %2, %4 : vector<8x64xf32>
    %cst_5 = arith.constant 0.000000e+00 : f32
    %6 = vector.broadcast %cst_5 : f32 to vector<8x64xf32>
    %7 = arith.maximumf %5, %6 : vector<8x64xf32>
    %c0_6 = arith.constant 0 : index
    %c0_7 = arith.constant 0 : index
    %8 = vector.load %arg4[%c0_6, %c0_7] : memref<64x32xf32, #tpu.memory_space<vmem>>, vector<64x32xf32>
    %cst_8 = arith.constant dense<0.000000e+00> : vector<8x32xf32>
    %9 = tpu.matmul %7, %8, %cst_8 {dimension_numbers = #tpu.dot_dimension_numbers<[1], [0], [0], [1], [0, 0, 1, 1], [], []>} : vector<8x64xf32>, vector<64x32xf32>, vector<8x32xf32> -> vector<8x32xf32>
    %c0_9 = arith.constant 0 : index
    %c0_10 = arith.constant 0 : index
    %10 = vector.load %arg5[%c0_9, %c0_10] : memref<1x32xf32, #tpu.memory_space<vmem>>, vector<1x32xf32>
    %11 = vector.broadcast %10 : vector<1x32xf32> to vector<8x32xf32>
    %12 = arith.addf %9, %11 : vector<8x32xf32>
    %cst_11 = arith.constant 0.000000e+00 : f32
    %13 = vector.broadcast %cst_11 : f32 to vector<8x32xf32>
    %14 = arith.maximumf %12, %13 : vector<8x32xf32>
    %c0_12 = arith.constant 0 : index
    %c0_13 = arith.constant 0 : index
    %15 = vector.load %arg6[%c0_12, %c0_13] : memref<32x16xf32, #tpu.memory_space<vmem>>, vector<32x16xf32>
    %cst_14 = arith.constant dense<0.000000e+00> : vector<8x16xf32>
    %16 = tpu.matmul %14, %15, %cst_14 {dimension_numbers = #tpu.dot_dimension_numbers<[1], [0], [0], [1], [0, 0, 1, 1], [], []>} : vector<8x32xf32>, vector<32x16xf32>, vector<8x16xf32> -> vector<8x16xf32>
    %c0_15 = arith.constant 0 : index
    %c0_16 = arith.constant 0 : index
    %17 = vector.load %arg7[%c0_15, %c0_16] : memref<1x16xf32, #tpu.memory_space<vmem>>, vector<1x16xf32>
    %18 = vector.broadcast %17 : vector<1x16xf32> to vector<8x16xf32>
    %19 = arith.addf %16, %18 : vector<8x16xf32>
    %cst_17 = arith.constant 0.000000e+00 : f32
    %20 = vector.broadcast %cst_17 : f32 to vector<8x16xf32>
    %21 = arith.maximumf %19, %20 : vector<8x16xf32>
    %c0_18 = arith.constant 0 : index
    %c0_19 = arith.constant 0 : index
    %22 = vector.load %arg8[%c0_18, %c0_19] : memref<16x4xf32, #tpu.memory_space<vmem>>, vector<16x4xf32>
    %cst_20 = arith.constant dense<0.000000e+00> : vector<8x4xf32>
    %23 = tpu.matmul %21, %22, %cst_20 {dimension_numbers = #tpu.dot_dimension_numbers<[1], [0], [0], [1], [0, 0, 1, 1], [], []>} : vector<8x16xf32>, vector<16x4xf32>, vector<8x4xf32> -> vector<8x4xf32>
    %c0_21 = arith.constant 0 : index
    %c0_22 = arith.constant 0 : index
    %24 = vector.load %arg9[%c0_21, %c0_22] : memref<1x4xf32, #tpu.memory_space<vmem>>, vector<1x4xf32>
    %25 = vector.broadcast %24 : vector<1x4xf32> to vector<8x4xf32>
    %26 = arith.addf %23, %25 : vector<8x4xf32>
    %c0_23 = arith.constant 0 : index
    %c0_24 = arith.constant 0 : index
    %27 = vector.load %arg10[%c0_23, %c0_24] : memref<8x4xf32, #tpu.memory_space<vmem>>, vector<8x4xf32>
    tpu.vector_store %arg10[%c0_23, %c0_24], %26 {strides = array<i32>} : memref<8x4xf32, #tpu.memory_space<vmem>>, vector<8x4xf32>,
    return
  }
  func.func @transform_0(%arg0: i32) -> (i32, i32) {
    %c0_i32 = arith.constant 0 : i32
    %c0_i32_0 = arith.constant 0 : i32
    return %arg0, %c0_i32 : i32, i32
  }
  func.func @transform_1(%arg0: i32) -> (i32, i32) {
    %c0_i32 = arith.constant 0 : i32
    %c0_i32_0 = arith.constant 0 : i32
    %c0_i32_1 = arith.constant 0 : i32
    return %c0_i32, %c0_i32_0 : i32, i32
  }
  func.func @transform_2(%arg0: i32) -> (i32, i32) {
    %c0_i32 = arith.constant 0 : i32
    %c0_i32_0 = arith.constant 0 : i32
    %c0_i32_1 = arith.constant 0 : i32
    return %c0_i32, %c0_i32_0 : i32, i32
  }
  func.func @transform_3(%arg0: i32) -> (i32, i32) {
    %c0_i32 = arith.constant 0 : i32
    %c0_i32_0 = arith.constant 0 : i32
    %c0_i32_1 = arith.constant 0 : i32
    return %c0_i32, %c0_i32_0 : i32, i32
  }
  func.func @transform_4(%arg0: i32) -> (i32, i32) {
    %c0_i32 = arith.constant 0 : i32
    %c0_i32_0 = arith.constant 0 : i32
    %c0_i32_1 = arith.constant 0 : i32
    return %c0_i32, %c0_i32_0 : i32, i32
  }
  func.func @transform_5(%arg0: i32) -> (i32, i32) {
    %c0_i32 = arith.constant 0 : i32
    %c0_i32_0 = arith.constant 0 : i32
    %c0_i32_1 = arith.constant 0 : i32
    return %c0_i32, %c0_i32_0 : i32, i32
  }
  func.func @transform_6(%arg0: i32) -> (i32, i32) {
    %c0_i32 = arith.constant 0 : i32
    %c0_i32_0 = arith.constant 0 : i32
    %c0_i32_1 = arith.constant 0 : i32
    return %c0_i32, %c0_i32_0 : i32, i32
  }
  func.func @transform_7(%arg0: i32) -> (i32, i32) {
    %c0_i32 = arith.constant 0 : i32
    %c0_i32_0 = arith.constant 0 : i32
    %c0_i32_1 = arith.constant 0 : i32
    return %c0_i32, %c0_i32_0 : i32, i32
  }
  func.func @transform_8(%arg0: i32) -> (i32, i32) {
    %c0_i32 = arith.constant 0 : i32
    %c0_i32_0 = arith.constant 0 : i32
    %c0_i32_1 = arith.constant 0 : i32
    return %c0_i32, %c0_i32_0 : i32, i32
  }
  func.func @transform_9(%arg0: i32) -> (i32, i32) {
    %c0_i32 = arith.constant 0 : i32
    %c0_i32_0 = arith.constant 0 : i32
    return %arg0, %c0_i32 : i32, i32
  }
}

</mosaic_0001>

<bundles_post_ra>
// kernel: tpu_custom_call.1
= control target key start
LH: loop header
LB: loop body
LE: loop exit
PB: predicated region body
PF: predicated region fallthrough
CT: control target
= control target key end

     0   :  { %vm41_vm0 = vcmask 64512   ;;  %v474_v0 = vmov 0.0   ;;  %vm475_vm1 = vmmov 0   ;;  %v476_v4 = vmov 0.0|0.0   ;;  %s594_s1 = inlined_call_operand.vmem [shape: f32[8,64], index: 1, kind: input, shape index: {}]   ;;  %s595_s0 = inlined_call_operand.vmem [shape: f32[8,8], index: 0, kind: input, shape index: {}]   ;;  %s596_s3 = inlined_call_operand.vmem [shape: f32[64,32], index: 3, kind: input, shape index: {}]   ;;  %s597_s5 = inlined_call_operand.vmem [shape: f32[32,16], index: 5, kind: input, shape index: {}]   ;;  %s598_s2 = inlined_call_operand.vmem [shape: f32[1,64], index: 2, kind: input, shape index: {}]   ;;  %s599_s4 = inlined_call_operand.vmem [shape: f32[1,32], index: 4, kind: input, shape index: {}]   ;;  %s600_s7 = inlined_call_operand.vmem [shape: f32[16,4], index: 7, kind: input, shape index: {}]   ;;  %s601_s6 = inlined_call_operand.vmem [shape: f32[1,16], index: 6, kind: input, shape index: {}]   ;;  %s602_s8 = inlined_call_operand.vmem [shape: f32[1,4], index: 8, kind: input, shape index: {}]   ;;  %s603_s9 = inlined_call_operand.vmem [shape: f32[8,4], index: 9, kind: output, shape index: {}]  }
   0x1   :  { %408 = vmatprep.subr.mxu0 %v474_v0  ;;  %v33_v1 = vld [vmem:[%s594_s1] sm:$0xff]  ;;  %410 = vmatprep.mubr.msk.f32.mxu0 %vm475_vm1, %v474_v0  ;;  %v117_v5 = vld [vmem:[%s596_s3 + $0x8] sm:$0xff]  ;;  %v118_v6 = vld [vmem:[%s596_s3 + $0x10] sm:$0xff]  ;;  %vm131_vm2 = vcmask 523264   ;;  %vm217_vm3 = vcmask 261120   ;;  %vm301_vm4 = vcmask 130048  }
   0x2   :  { %v32_v2 = vld [vmem:[%s595_s0] sm:$0xff]  ;;  %409 = vmatpush3.msra.mxu0 %v33_v1  ;;  %450 = vmatprep.subr.bf16.mxu1 %v476_v4  ;;  %v119_v7 = vld [vmem:[%s596_s3 + $0x18] sm:$0xff]  ;;  %v121_v11 = vld [vmem:[%s596_s3 + $0x28] sm:$0xff]  ;;  %vm375_vm5 = vcmask 31744  }
   0x3   :  { %v116_v3 = vld [vmem:[%s596_s3] sm:$0xff]  ;;  %411 = vmatmul.mubr.msk.f32.vlgmr.msra.gmra.mrb[0].mxu0 %vm41_vm0, %v32_v2  ;;  %429 = vmatprep.mubr.msk.f32.mxu1 %vm475_vm1, %v474_v0  ;;  %v454_v9 = vpack.c.bf16 %v119_v7, %v118_v6  ;;  %v122_v13 = vld [vmem:[%s596_s3 + $0x30] sm:$0xff]  ;;  %v123_v14 = vld [vmem:[%s596_s3 + $0x38] sm:$0xff] }
   0x4   :  { %v451_v8 = vpack.c.bf16 %v117_v5, %v116_v3  ;;  %462 = vmatprep.subr.bf16.mxu0 %v476_v4  ;;  %440 = vmatprep.mubr.msk.f32.mxu0 %vm475_vm1, %v474_v0  ;;  %v120_v10 = vld [vmem:[%s596_s3 + $0x20] sm:$0xff]  ;;  %v460_v15 = vpack.c.bf16 %v123_v14, %v122_v13  ;;  %v207_v17 = vld [vmem:[%s597_s5 + $0x8] sm:$0xff]  ;;  %v208_v24 = vld [vmem:[%s597_s5 + $0x10] sm:$0xff] }
   0x5   :  { %v457_v12 = vpack.c.bf16 %v121_v11, %v120_v10  ;;  %v206_v16 = vld [vmem:[%s597_s5] sm:$0xff]  ;;  %v209_v25 = vld [vmem:[%s597_s5 + $0x18] sm:$0xff]  ;;  %v293_v33 = vld [vmem:[%s600_s7 + $0x8] sm:$0xff] }
   0x6   :  { %452 = vmatpush3.bf16.msra.mxu1 %v451_v8  ;;  %v463_v18 = vpack.c.bf16 %v207_v17, %v206_v16  ;;  %v381_v19 = vld [vmem:[%s598_s2] ss:$0 sm:$0xff]  ;;  %v466_v26 = vpack.c.bf16 %v209_v25, %v208_v24 }
   0x7   :  { %453 = vmatprep.subr.bf16.mxu1 %v476_v4  ;;  %v383_v27 = vld [vmem:[%s599_s4] ss:$0 sm:$0xff] }
   0x8   :  { %464 = vmatpush3.bf16.msra.mxu0 %v463_v18  ;;  %v292_v32 = vld [vmem:[%s600_s7] sm:$0xff] }
   0x9   :  { %465 = vmatprep.subr.bf16.mxu0 %v476_v4  ;;  %v469_v34 = vpack.c.bf16 %v293_v33, %v292_v32  ;;  %v385_v35 = vld [vmem:[%s601_s6] ss:$0 sm:$0xff] }
   0xa   :  { %455 = vmatpush3.bf16.msra.mxu1 %v454_v9  ;;  %v387_v40 = vld [vmem:[%s602_s8] ss:$0 sm:$0xff] }
   0xb   :  { %456 = vmatprep.subr.bf16.mxu1 %v476_v4 }
   0xc   :  { %467 = vmatpush3.bf16.msra.mxu0 %v466_v26 }
   0xd   :  { %468 = vmatprep.subr.bf16.mxu0 %v476_v4 }
   0xe   :  { %458 = vmatpush3.bf16.msra.mxu1 %v457_v12 }
   0xf   :  { %459 = vmatprep.subr.bf16.mxu1 %v476_v4 }
  0x12   :  { %461 = vmatpush3.bf16.msra.mxu1 %v460_v15 }
  0xd6   :  { %v111_v20 = vpop.f32.mrb[0].mxu0 }
  0xd7   :  { %v112_v21 = vadd.f32 %v381_v19, %v111_v20  ;;  %v412_v22 = vpop.f32.mrb[1].mxu0 }
  0xd9   :  { %v115_v23 = vmax.f32 %v112_v21, 0.0 }
  0xdb   :  { %430 = vmatmul.mubr.msk.f32.vlgmr.msra.gmra.mrb[0].mxu1 %vm131_vm2, %v115_v23 }
 0x1ae   :  { %v201_v28 = vpop.f32.mrb[0].mxu1 }
 0x1af   :  { %v202_v29 = vadd.f32 %v383_v27, %v201_v28  ;;  %v431_v30 = vpop.f32.mrb[1].mxu1 }
 0x1b1   :  { %v205_v31 = vmax.f32 %v202_v29, 0.0 }
 0x1b3   :  { %441 = vmatmul.mubr.msk.f32.vlgmr.msra.gmra.mrb[2].mxu0 %vm217_vm3, %v205_v31 }
 0x1b4   :  { %447 = vmatprep.mubr.msk.f32.mxu0 %vm475_vm1, %v474_v0  ;;  %470 = vmatpush3.bf16.msra.mxu0 %v469_v34 }
 0x286   :  { %v287_v36 = vpop.f32.mrb[2].mxu0 }
 0x287   :  { %v288_v37 = vadd.f32 %v385_v35, %v287_v36  ;;  %v442_v38 = vpop.f32.mrb[3].mxu0 }
 0x289   :  { %v291_v39 = vmax.f32 %v288_v37, 0.0 }
 0x28b   :  { %448 = vmatmul.mubr.msk.f32.vlgmr.msra.gmra.mrb[4].mxu0 %vm301_vm4, %v291_v39 }
 0x35e   :  { %v371_v41 = vpop.f32.mrb[4].mxu0 }
 0x35f   :  { %v372_v42 = vadd.f32 %v387_v40, %v371_v41  ;;  %v449_v43 = vpop.f32.mrb[5].mxu0 }
 0x361   :  { %376 = vst.msk [vmem:[%s603_s9] sm:$0xff] %vm375_vm5, %v372_v42 }

</bundles_post_ra>
